<compile_context>
chip_gen: v7x
topology: tpu7x:2x2x1
jax: 0.10.0
libtpu: 0.0.40
codegen_flags: <defaults>
</compile_context>

<pallas_src>
from functools import partial

import jax
import jax.numpy as jnp
from jax.experimental import pallas as pl
from jax.experimental.pallas import tpu as pltpu


def _round_up(n, m):
    return ((n + m - 1) // m) * m


def _conv3dmod_kernel(wmod_ref, *refs, k, cp, outp, ol, wp, dil):
    # wmod_ref : (1, k^3, OUTp, Cp)  modulated+demodulated weights (batch-resident)
    # refs[:k] : k x (1, 1, Cp, PL)  padded input depth planes od + dil*kd,
    #                                with the (h, w) plane flattened on lanes
    # refs[k]  : (1, 1, OUTp, OL)    output plane for depth od (padded hw frame)
    x_refs = refs[:k]
    o_ref = refs[k]
    acc = jnp.zeros((outp, ol), jnp.float32)
    for kd in range(k):
        xp = x_refs[kd][0, 0]                           # (Cp, PL)
        for kh in range(k):
            for kw_ in range(k):
                t = (kd * k + kh) * k + kw_
                off = dil * (kh * wp + kw_)             # static flat shift
                w_t = wmod_ref[0, t]                    # (OUTp, Cp)
                x_t = xp[:, off:off + ol]               # (Cp, OL) static slice
                acc = acc + jnp.dot(w_t, x_t,
                                    preferred_element_type=jnp.float32)
    o_ref[0, 0] = acc.astype(o_ref.dtype)


def conv3d_mod(x, y, weight, *, demod=True, stride=1, dilation=1, eps=1e-8):
    """Conv3DMod forward.  x: (b, c, d, h, w), y: (b, c), weight: (out, c, k, k, k)."""
    b, c, d, h, w = x.shape
    out_chan, in_chan, k, _, _ = weight.shape
    assert in_chan == c
    assert stride == 1, "Pallas Conv3DMod supports stride=1 (the module default)"
    # TODO(synk): general stride changes the output spatial size; not implemented.

    pad = ((h - 1) * (stride - 1) + dilation * (k - 1)) // 2   # module's formula
    do = d + 2 * pad - dilation * (k - 1)
    ho = h + 2 * pad - dilation * (k - 1)
    wo = w + 2 * pad - dilation * (k - 1)
    dp, hp, wp = d + 2 * pad, h + 2 * pad, w + 2 * pad

    cp = _round_up(c, 8)                    # sublane-aligned input channels
    outp = _round_up(out_chan, 8)           # sublane-aligned output channels
    hw = hp * wp
    ol = _round_up(hw, 128)                 # lane-dense output plane length
    max_off = dilation * ((k - 1) * wp + (k - 1))
    pl_in = _round_up(ol + max_off, 128)    # input plane length incl. shift halo

    f32 = jnp.float32
    # ---- modulation + demodulation, hoisted out of the kernel (f32) ----
    wm = weight.astype(f32)[None] * (y.astype(f32) + 1.0)[:, None, :, None, None, None]
    if demod:
        dem = jax.lax.rsqrt(jnp.sum(wm * wm, axis=(2, 3, 4, 5), keepdims=True) + eps)
        wm = wm * dem
    # (b, OUT, C, kd, kh, kw) -> (b, kd, kh, kw, OUT, C) -> zero-pad -> (b, k^3, OUTp, Cp)
    wm = jnp.transpose(wm, (0, 3, 4, 5, 1, 2))
    wm = jnp.pad(wm, ((0, 0),) * 4 + ((0, outp - out_chan), (0, cp - c)))
    wm = wm.reshape(b, k ** 3, outp, cp).astype(x.dtype)

    # ---- input: zero-pad channels + spatial, flatten the (h, w) plane ----
    xpad = jnp.pad(x, ((0, 0), (0, cp - c), (pad, pad), (pad, pad), (pad, pad)))
    xflat = jnp.transpose(xpad, (0, 2, 1, 3, 4)).reshape(b, dp, cp, hw)
    xflat = jnp.pad(xflat, ((0, 0), (0, 0), (0, 0), (0, pl_in - hw)))

    grid = (b, do)
    in_specs = [pl.BlockSpec((1, k ** 3, outp, cp), lambda bi, di: (bi, 0, 0, 0))]
    for kd in range(k):
        # block size 1 along padded depth -> block index == element index (od + dil*kd)
        in_specs.append(
            pl.BlockSpec((1, 1, cp, pl_in),
                         lambda bi, di, _kd=kd: (bi, di + dilation * _kd, 0, 0)))
    out_specs = pl.BlockSpec((1, 1, outp, ol), lambda bi, di: (bi, di, 0, 0))

    isz = jnp.dtype(x.dtype).itemsize
    vmem_needed = 2 * isz * (k ** 3 * outp * cp + k * cp * pl_in + outp * ol)
    vmem_limit = int(min(max(4 * vmem_needed, 32 << 20), 48 << 20))
    cost = pl.CostEstimate(
        flops=2 * b * do * (k ** 3) * outp * cp * ol,
        transcendentals=0,
        bytes_accessed=isz * (b * do * k * cp * pl_in
                              + b * (k ** 3) * outp * cp
                              + b * do * outp * ol))

    out_ext = pl.pallas_call(
        partial(_conv3dmod_kernel, k=k, cp=cp, outp=outp, ol=ol, wp=wp, dil=dilation),
        out_shape=jax.ShapeDtypeStruct((b, do, outp, ol), x.dtype),
        grid_spec=pltpu.PrefetchScalarGridSpec(
            num_scalar_prefetch=0,
            grid=grid,
            in_specs=in_specs,
            out_specs=out_specs),
        compiler_params=pltpu.CompilerParams(
            dimension_semantics=("parallel", "parallel"),
            vmem_limit_bytes=vmem_limit),
        cost_estimate=cost,
    )(wm, *([xflat] * k))

    # (b, do, OUTp, OL) -> valid (h, w) window -> (b, OUT, do, ho, wo)
    out = out_ext[:, :, :out_chan, :hw].reshape(b, do, out_chan, hp, wp)
    out = out[:, :, :, :ho, :wo]
    return jnp.transpose(out, (0, 2, 1, 3, 4))


# --------------------------- pure-JAX reference ------------------------------
def conv3dmod_ref(x, y, weight, *, demod=True, stride=1, dilation=1, eps=1e-8):
    b, c, d, h, w = x.shape
    out_chan, _, k, _, _ = weight.shape
    w1 = y[:, None, :, None, None, None]
    weights = weight[None] * (w1 + 1.0)
    if demod:
        dem = jax.lax.rsqrt(
            jnp.sum(weights ** 2, axis=(2, 3, 4, 5), keepdims=True) + eps)
        weights = weights * dem
    pad = ((h - 1) * (stride - 1) + dilation * (k - 1)) // 2
    xr = x.reshape(1, b * c, d, h, w)
    wr = weights.reshape(b * out_chan, c, k, k, k)
    out = jax.lax.conv_general_dilated(
        xr, wr,
        window_strides=(stride,) * 3,
        padding=[(pad, pad)] * 3,
        rhs_dilation=(dilation,) * 3,
        dimension_numbers=("NCDHW", "OIDHW", "NCDHW"),
        feature_group_count=b,
    )
    return out.reshape(b, out_chan, *out.shape[2:])


if __name__ == "__main__":
    key = jax.random.PRNGKey(0)
    kx, ky, kw = jax.random.split(key, 3)

    # ---- main config (matches the module defaults) ----
    b, c, out_chan, k = 2, 4, 8, 3
    d = h = w = 8
    x = jax.random.normal(kx, (b, c, d, h, w), dtype=jnp.float32)
    y = jax.random.normal(ky, (b, c), dtype=jnp.float32)
    fan_in = c * k ** 3          # kaiming_normal_(fan_in, leaky_relu a=0)
    weight = jax.random.normal(kw, (out_chan, c, k, k, k), dtype=jnp.float32)
    weight = weight * jnp.sqrt(2.0 / fan_in)

    out = jax.block_until_ready(conv3d_mod(x, y, weight, demod=True))
    ref = conv3dmod_ref(x, y, weight, demod=True)
    assert out.shape == (b, out_chan, d, h, w), out.shape
    err = float(jnp.max(jnp.abs(out - ref)))
    assert err < 1e-3, f"max abs err {err}"

    # ---- second config: non-multiple-of-8 channels + non-cubic spatial ----
    k2 = jax.random.PRNGKey(1)
    kx2, ky2, kw2 = jax.random.split(k2, 3)
    b2, c2, o2, kk = 1, 3, 6, 3
    d2, h2, w2 = 4, 5, 6
    x2 = jax.random.normal(kx2, (b2, c2, d2, h2, w2), dtype=jnp.float32)
    y2 = jax.random.normal(ky2, (b2, c2), dtype=jnp.float32)
    w2_ = jax.random.normal(kw2, (o2, c2, kk, kk, kk), dtype=jnp.float32)
    w2_ = w2_ * jnp.sqrt(2.0 / (c2 * kk ** 3))
    out2 = jax.block_until_ready(conv3d_mod(x2, y2, w2_, demod=True))
    ref2 = conv3dmod_ref(x2, y2, w2_, demod=True)
    assert out2.shape == ref2.shape, (out2.shape, ref2.shape)
    err2 = float(jnp.max(jnp.abs(out2 - ref2)))
    assert err2 < 1e-3, f"max abs err {err2}"

    print("KERNEL_OK")
</pallas_src>

<mosaic_0001>
module attributes {stable_mosaic.version = 11 : i64} {
  func.func @_conv3dmod_kernel(%arg0: i32, %arg1: i32, %arg2: memref<1x27x8x8xf32, #tpu.memory_space<vmem>>, %arg3: memref<1x1x8x256xf32, #tpu.memory_space<vmem>>, %arg4: memref<1x1x8x256xf32, #tpu.memory_space<vmem>>, %arg5: memref<1x1x8x256xf32, #tpu.memory_space<vmem>>, %arg6: memref<1x1x8x128xf32, #tpu.memory_space<vmem>>) attributes {dimension_semantics = [#tpu.dimension_semantics<parallel>, #tpu.dimension_semantics<parallel>], iteration_bounds = array<i64: 2, 8>, scalar_prefetch = 0 : i64, scratch_operands = 0 : i64, tpu.core_type = #tpu.core_type<tc>, window_params = [{transform_indices = @transform_0, window_bounds = array<i64: 1, 27, 8, 8>}, {transform_indices = @transform_1, window_bounds = array<i64: 1, 1, 8, 256>}, {transform_indices = @transform_2, window_bounds = array<i64: 1, 1, 8, 256>}, {transform_indices = @transform_3, window_bounds = array<i64: 1, 1, 8, 256>}, {transform_indices = @transform_4, window_bounds = array<i64: 1, 1, 8, 128>}]} {
    %cst = arith.constant 0.000000e+00 : f32
    %0 = vector.broadcast %cst : f32 to vector<8x128xf32>
    %c0 = arith.constant 0 : index
    %c0_0 = arith.constant 0 : index
    %c0_1 = arith.constant 0 : index
    %c0_2 = arith.constant 0 : index
    %1 = vector.load %arg3[%c0, %c0_0, %c0_1, %c0_2] : memref<1x1x8x256xf32, #tpu.memory_space<vmem>>, vector<1x1x8x256xf32>
    %2 = vector.shape_cast %1 : vector<1x1x8x256xf32> to vector<8x256xf32>
    %c0_3 = arith.constant 0 : index
    %c0_4 = arith.constant 0 : index
    %c0_5 = arith.constant 0 : index
    %c0_6 = arith.constant 0 : index
    %3 = vector.load %arg2[%c0_3, %c0_4, %c0_5, %c0_6] : memref<1x27x8x8xf32, #tpu.memory_space<vmem>>, vector<1x1x8x8xf32>
    %4 = vector.shape_cast %3 : vector<1x1x8x8xf32> to vector<8x8xf32>
    %5 = vector.extract_strided_slice %2 {offsets = [0, 0], sizes = [8, 128], strides = [1, 1]} : vector<8x256xf32> to vector<8x128xf32>
    %cst_7 = arith.constant dense<0.000000e+00> : vector<8x128xf32>
    %6 = tpu.matmul %4, %5, %cst_7 {dimension_numbers = #tpu.dot_dimension_numbers<[1], [0], [0], [1], [0, 0, 1, 1], [], []>} : vector<8x8xf32>, vector<8x128xf32>, vector<8x128xf32> -> vector<8x128xf32>
    %7 = arith.addf %0, %6 : vector<8x128xf32>
    %c0_8 = arith.constant 0 : index
    %c1 = arith.constant 1 : index
    %c0_9 = arith.constant 0 : index
    %c0_10 = arith.constant 0 : index
    %8 = vector.load %arg2[%c0_8, %c1, %c0_9, %c0_10] : memref<1x27x8x8xf32, #tpu.memory_space<vmem>>, vector<1x1x8x8xf32>
    %9 = vector.shape_cast %8 : vector<1x1x8x8xf32> to vector<8x8xf32>
    %10 = vector.extract_strided_slice %2 {offsets = [0, 1], sizes = [8, 128], strides = [1, 1]} : vector<8x256xf32> to vector<8x128xf32>
    %cst_11 = arith.constant dense<0.000000e+00> : vector<8x128xf32>
    %11 = tpu.matmul %9, %10, %cst_11 {dimension_numbers = #tpu.dot_dimension_numbers<[1], [0], [0], [1], [0, 0, 1, 1], [], []>} : vector<8x8xf32>, vector<8x128xf32>, vector<8x128xf32> -> vector<8x128xf32>
    %12 = arith.addf %7, %11 : vector<8x128xf32>
    %c0_12 = arith.constant 0 : index
    %c2 = arith.constant 2 : index
    %c0_13 = arith.constant 0 : index
    %c0_14 = arith.constant 0 : index
    %13 = vector.load %arg2[%c0_12, %c2, %c0_13, %c0_14] : memref<1x27x8x8xf32, #tpu.memory_space<vmem>>, vector<1x1x8x8xf32>
    %14 = vector.shape_cast %13 : vector<1x1x8x8xf32> to vector<8x8xf32>
    %15 = vector.extract_strided_slice %2 {offsets = [0, 2], sizes = [8, 128], strides = [1, 1]} : vector<8x256xf32> to vector<8x128xf32>
    %cst_15 = arith.constant dense<0.000000e+00> : vector<8x128xf32>
    %16 = tpu.matmul %14, %15, %cst_15 {dimension_numbers = #tpu.dot_dimension_numbers<[1], [0], [0], [1], [0, 0, 1, 1], [], []>} : vector<8x8xf32>, vector<8x128xf32>, vector<8x128xf32> -> vector<8x128xf32>
    %17 = arith.addf %12, %16 : vector<8x128xf32>
    %c0_16 = arith.constant 0 : index
    %c3 = arith.constant 3 : index
    %c0_17 = arith.constant 0 : index
    %c0_18 = arith.constant 0 : index
    %18 = vector.load %arg2[%c0_16, %c3, %c0_17, %c0_18] : memref<1x27x8x8xf32, #tpu.memory_space<vmem>>, vector<1x1x8x8xf32>
    %19 = vector.shape_cast %18 : vector<1x1x8x8xf32> to vector<8x8xf32>
    %20 = vector.extract_strided_slice %2 {offsets = [0, 10], sizes = [8, 128], strides = [1, 1]} : vector<8x256xf32> to vector<8x128xf32>
    %cst_19 = arith.constant dense<0.000000e+00> : vector<8x128xf32>
    %21 = tpu.matmul %19, %20, %cst_19 {dimension_numbers = #tpu.dot_dimension_numbers<[1], [0], [0], [1], [0, 0, 1, 1], [], []>} : vector<8x8xf32>, vector<8x128xf32>, vector<8x128xf32> -> vector<8x128xf32>
    %22 = arith.addf %17, %21 : vector<8x128xf32>
    %c0_20 = arith.constant 0 : index
    %c4 = arith.constant 4 : index
    %c0_21 = arith.constant 0 : index
    %c0_22 = arith.constant 0 : index
    %23 = vector.load %arg2[%c0_20, %c4, %c0_21, %c0_22] : memref<1x27x8x8xf32, #tpu.memory_space<vmem>>, vector<1x1x8x8xf32>
    %24 = vector.shape_cast %23 : vector<1x1x8x8xf32> to vector<8x8xf32>
    %25 = vector.extract_strided_slice %2 {offsets = [0, 11], sizes = [8, 128], strides = [1, 1]} : vector<8x256xf32> to vector<8x128xf32>
    %cst_23 = arith.constant dense<0.000000e+00> : vector<8x128xf32>
    %26 = tpu.matmul %24, %25, %cst_23 {dimension_numbers = #tpu.dot_dimension_numbers<[1], [0], [0], [1], [0, 0, 1, 1], [], []>} : vector<8x8xf32>, vector<8x128xf32>, vector<8x128xf32> -> vector<8x128xf32>
    %27 = arith.addf %22, %26 : vector<8x128xf32>
    %c0_24 = arith.constant 0 : index
    %c5 = arith.constant 5 : index
    %c0_25 = arith.constant 0 : index
    %c0_26 = arith.constant 0 : index
    %28 = vector.load %arg2[%c0_24, %c5, %c0_25, %c0_26] : memref<1x27x8x8xf32, #tpu.memory_space<vmem>>, vector<1x1x8x8xf32>
    %29 = vector.shape_cast %28 : vector<1x1x8x8xf32> to vector<8x8xf32>
    %30 = vector.extract_strided_slice %2 {offsets = [0, 12], sizes = [8, 128], strides = [1, 1]} : vector<8x256xf32> to vector<8x128xf32>
    %cst_27 = arith.constant dense<0.000000e+00> : vector<8x128xf32>
    %31 = tpu.matmul %29, %30, %cst_27 {dimension_numbers = #tpu.dot_dimension_numbers<[1], [0], [0], [1], [0, 0, 1, 1], [], []>} : vector<8x8xf32>, vector<8x128xf32>, vector<8x128xf32> -> vector<8x128xf32>
    %32 = arith.addf %27, %31 : vector<8x128xf32>
    %c0_28 = arith.constant 0 : index
    %c6 = arith.constant 6 : index
    %c0_29 = arith.constant 0 : index
    %c0_30 = arith.constant 0 : index
    %33 = vector.load %arg2[%c0_28, %c6, %c0_29, %c0_30] : memref<1x27x8x8xf32, #tpu.memory_space<vmem>>, vector<1x1x8x8xf32>
    %34 = vector.shape_cast %33 : vector<1x1x8x8xf32> to vector<8x8xf32>
    %35 = vector.extract_strided_slice %2 {offsets = [0, 20], sizes = [8, 128], strides = [1, 1]} : vector<8x256xf32> to vector<8x128xf32>
    %cst_31 = arith.constant dense<0.000000e+00> : vector<8x128xf32>
    %36 = tpu.matmul %34, %35, %cst_31 {dimension_numbers = #tpu.dot_dimension_numbers<[1], [0], [0], [1], [0, 0, 1, 1], [], []>} : vector<8x8xf32>, vector<8x128xf32>, vector<8x128xf32> -> vector<8x128xf32>
    %37 = arith.addf %32, %36 : vector<8x128xf32>
    %c0_32 = arith.constant 0 : index
    %c7 = arith.constant 7 : index
    %c0_33 = arith.constant 0 : index
    %c0_34 = arith.constant 0 : index
    %38 = vector.load %arg2[%c0_32, %c7, %c0_33, %c0_34] : memref<1x27x8x8xf32, #tpu.memory_space<vmem>>, vector<1x1x8x8xf32>
    %39 = vector.shape_cast %38 : vector<1x1x8x8xf32> to vector<8x8xf32>
    %40 = vector.extract_strided_slice %2 {offsets = [0, 21], sizes = [8, 128], strides = [1, 1]} : vector<8x256xf32> to vector<8x128xf32>
    %cst_35 = arith.constant dense<0.000000e+00> : vector<8x128xf32>
    %41 = tpu.matmul %39, %40, %cst_35 {dimension_numbers = #tpu.dot_dimension_numbers<[1], [0], [0], [1], [0, 0, 1, 1], [], []>} : vector<8x8xf32>, vector<8x128xf32>, vector<8x128xf32> -> vector<8x128xf32>
    %42 = arith.addf %37, %41 : vector<8x128xf32>
    %c0_36 = arith.constant 0 : index
    %c8 = arith.constant 8 : index
    %c0_37 = arith.constant 0 : index
    %c0_38 = arith.constant 0 : index
    %43 = vector.load %arg2[%c0_36, %c8, %c0_37, %c0_38] : memref<1x27x8x8xf32, #tpu.memory_space<vmem>>, vector<1x1x8x8xf32>
    %44 = vector.shape_cast %43 : vector<1x1x8x8xf32> to vector<8x8xf32>
    %45 = vector.extract_strided_slice %2 {offsets = [0, 22], sizes = [8, 128], strides = [1, 1]} : vector<8x256xf32> to vector<8x128xf32>
    %cst_39 = arith.constant dense<0.000000e+00> : vector<8x128xf32>
    %46 = tpu.matmul %44, %45, %cst_39 {dimension_numbers = #tpu.dot_dimension_numbers<[1], [0], [0], [1], [0, 0, 1, 1], [], []>} : vector<8x8xf32>, vector<8x128xf32>, vector<8x128xf32> -> vector<8x128xf32>
    %47 = arith.addf %42, %46 : vector<8x128xf32>
    %c0_40 = arith.constant 0 : index
    %c0_41 = arith.constant 0 : index
    %c0_42 = arith.constant 0 : index
    %c0_43 = arith.constant 0 : index
    %48 = vector.load %arg4[%c0_40, %c0_41, %c0_42, %c0_43] : memref<1x1x8x256xf32, #tpu.memory_space<vmem>>, vector<1x1x8x256xf32>
    %49 = vector.shape_cast %48 : vector<1x1x8x256xf32> to vector<8x256xf32>
    %c0_44 = arith.constant 0 : index
    %c9 = arith.constant 9 : index
    %c0_45 = arith.constant 0 : index
    %c0_46 = arith.constant 0 : index
    %50 = vector.load %arg2[%c0_44, %c9, %c0_45, %c0_46] : memref<1x27x8x8xf32, #tpu.memory_space<vmem>>, vector<1x1x8x8xf32>
    %51 = vector.shape_cast %50 : vector<1x1x8x8xf32> to vector<8x8xf32>
    %52 = vector.extract_strided_slice %49 {offsets = [0, 0], sizes = [8, 128], strides = [1, 1]} : vector<8x256xf32> to vector<8x128xf32>
    %cst_47 = arith.constant dense<0.000000e+00> : vector<8x128xf32>
    %53 = tpu.matmul %51, %52, %cst_47 {dimension_numbers = #tpu.dot_dimension_numbers<[1], [0], [0], [1], [0, 0, 1, 1], [], []>} : vector<8x8xf32>, vector<8x128xf32>, vector<8x128xf32> -> vector<8x128xf32>
    %54 = arith.addf %47, %53 : vector<8x128xf32>
    %c0_48 = arith.constant 0 : index
    %c10 = arith.constant 10 : index
    %c0_49 = arith.constant 0 : index
    %c0_50 = arith.constant 0 : index
    %55 = vector.load %arg2[%c0_48, %c10, %c0_49, %c0_50] : memref<1x27x8x8xf32, #tpu.memory_space<vmem>>, vector<1x1x8x8xf32>
    %56 = vector.shape_cast %55 : vector<1x1x8x8xf32> to vector<8x8xf32>
    %57 = vector.extract_strided_slice %49 {offsets = [0, 1], sizes = [8, 128], strides = [1, 1]} : vector<8x256xf32> to vector<8x128xf32>
    %cst_51 = arith.constant dense<0.000000e+00> : vector<8x128xf32>
    %58 = tpu.matmul %56, %57, %cst_51 {dimension_numbers = #tpu.dot_dimension_numbers<[1], [0], [0], [1], [0, 0, 1, 1], [], []>} : vector<8x8xf32>, vector<8x128xf32>, vector<8x128xf32> -> vector<8x128xf32>
    %59 = arith.addf %54, %58 : vector<8x128xf32>
    %c0_52 = arith.constant 0 : index
    %c11 = arith.constant 11 : index
    %c0_53 = arith.constant 0 : index
    %c0_54 = arith.constant 0 : index
    %60 = vector.load %arg2[%c0_52, %c11, %c0_53, %c0_54] : memref<1x27x8x8xf32, #tpu.memory_space<vmem>>, vector<1x1x8x8xf32>
    %61 = vector.shape_cast %60 : vector<1x1x8x8xf32> to vector<8x8xf32>
    %62 = vector.extract_strided_slice %49 {offsets = [0, 2], sizes = [8, 128], strides = [1, 1]} : vector<8x256xf32> to vector<8x128xf32>
    %cst_55 = arith.constant dense<0.000000e+00> : vector<8x128xf32>
    %63 = tpu.matmul %61, %62, %cst_55 {dimension_numbers = #tpu.dot_dimension_numbers<[1], [0], [0], [1], [0, 0, 1, 1], [], []>} : vector<8x8xf32>, vector<8x128xf32>, vector<8x128xf32> -> vector<8x128xf32>
    %64 = arith.addf %59, %63 : vector<8x128xf32>
    %c0_56 = arith.constant 0 : index
    %c12 = arith.constant 12 : index
    %c0_57 = arith.constant 0 : index
    %c0_58 = arith.constant 0 : index
    %65 = vector.load %arg2[%c0_56, %c12, %c0_57, %c0_58] : memref<1x27x8x8xf32, #tpu.memory_space<vmem>>, vector<1x1x8x8xf32>
    %66 = vector.shape_cast %65 : vector<1x1x8x8xf32> to vector<8x8xf32>
    %67 = vector.extract_strided_slice %49 {offsets = [0, 10], sizes = [8, 128], strides = [1, 1]} : vector<8x256xf32> to vector<8x128xf32>
    %cst_59 = arith.constant dense<0.000000e+00> : vector<8x128xf32>
    %68 = tpu.matmul %66, %67, %cst_59 {dimension_numbers = #tpu.dot_dimension_numbers<[1], [0], [0], [1], [0, 0, 1, 1], [], []>} : vector<8x8xf32>, vector<8x128xf32>, vector<8x128xf32> -> vector<8x128xf32>
    %69 = arith.addf %64, %68 : vector<8x128xf32>
    %c0_60 = arith.constant 0 : index
    %c13 = arith.constant 13 : index
    %c0_61 = arith.constant 0 : index
    %c0_62 = arith.constant 0 : index
    %70 = vector.load %arg2[%c0_60, %c13, %c0_61, %c0_62] : memref<1x27x8x8xf32, #tpu.memory_space<vmem>>, vector<1x1x8x8xf32>
    %71 = vector.shape_cast %70 : vector<1x1x8x8xf32> to vector<8x8xf32>
    %72 = vector.extract_strided_slice %49 {offsets = [0, 11], sizes = [8, 128], strides = [1, 1]} : vector<8x256xf32> to vector<8x128xf32>
    %cst_63 = arith.constant dense<0.000000e+00> : vector<8x128xf32>
    %73 = tpu.matmul %71, %72, %cst_63 {dimension_numbers = #tpu.dot_dimension_numbers<[1], [0], [0], [1], [0, 0, 1, 1], [], []>} : vector<8x8xf32>, vector<8x128xf32>, vector<8x128xf32> -> vector<8x128xf32>
    %74 = arith.addf %69, %73 : vector<8x128xf32>
    %c0_64 = arith.constant 0 : index
    %c14 = arith.constant 14 : index
    %c0_65 = arith.constant 0 : index
    %c0_66 = arith.constant 0 : index
    %75 = vector.load %arg2[%c0_64, %c14, %c0_65, %c0_66] : memref<1x27x8x8xf32, #tpu.memory_space<vmem>>, vector<1x1x8x8xf32>
    %76 = vector.shape_cast %75 : vector<1x1x8x8xf32> to vector<8x8xf32>
    %77 = vector.extract_strided_slice %49 {offsets = [0, 12], sizes = [8, 128], strides = [1, 1]} : vector<8x256xf32> to vector<8x128xf32>
    %cst_67 = arith.constant dense<0.000000e+00> : vector<8x128xf32>
    %78 = tpu.matmul %76, %77, %cst_67 {dimension_numbers = #tpu.dot_dimension_numbers<[1], [0], [0], [1], [0, 0, 1, 1], [], []>} : vector<8x8xf32>, vector<8x128xf32>, vector<8x128xf32> -> vector<8x128xf32>
    %79 = arith.addf %74, %78 : vector<8x128xf32>
    %c0_68 = arith.constant 0 : index
    %c15 = arith.constant 15 : index
    %c0_69 = arith.constant 0 : index
    %c0_70 = arith.constant 0 : index
    %80 = vector.load %arg2[%c0_68, %c15, %c0_69, %c0_70] : memref<1x27x8x8xf32, #tpu.memory_space<vmem>>, vector<1x1x8x8xf32>
    %81 = vector.shape_cast %80 : vector<1x1x8x8xf32> to vector<8x8xf32>
    %82 = vector.extract_strided_slice %49 {offsets = [0, 20], sizes = [8, 128], strides = [1, 1]} : vector<8x256xf32> to vector<8x128xf32>
    %cst_71 = arith.constant dense<0.000000e+00> : vector<8x128xf32>
    %83 = tpu.matmul %81, %82, %cst_71 {dimension_numbers = #tpu.dot_dimension_numbers<[1], [0], [0], [1], [0, 0, 1, 1], [], []>} : vector<8x8xf32>, vector<8x128xf32>, vector<8x128xf32> -> vector<8x128xf32>
    %84 = arith.addf %79, %83 : vector<8x128xf32>
    %c0_72 = arith.constant 0 : index
    %c16 = arith.constant 16 : index
    %c0_73 = arith.constant 0 : index
    %c0_74 = arith.constant 0 : index
    %85 = vector.load %arg2[%c0_72, %c16, %c0_73, %c0_74] : memref<1x27x8x8xf32, #tpu.memory_space<vmem>>, vector<1x1x8x8xf32>
    %86 = vector.shape_cast %85 : vector<1x1x8x8xf32> to vector<8x8xf32>
    %87 = vector.extract_strided_slice %49 {offsets = [0, 21], sizes = [8, 128], strides = [1, 1]} : vector<8x256xf32> to vector<8x128xf32>
    %cst_75 = arith.constant dense<0.000000e+00> : vector<8x128xf32>
    %88 = tpu.matmul %86, %87, %cst_75 {dimension_numbers = #tpu.dot_dimension_numbers<[1], [0], [0], [1], [0, 0, 1, 1], [], []>} : vector<8x8xf32>, vector<8x128xf32>, vector<8x128xf32> -> vector<8x128xf32>
    %89 = arith.addf %84, %88 : vector<8x128xf32>
    %c0_76 = arith.constant 0 : index
    %c17 = arith.constant 17 : index
    %c0_77 = arith.constant 0 : index
    %c0_78 = arith.constant 0 : index
    %90 = vector.load %arg2[%c0_76, %c17, %c0_77, %c0_78] : memref<1x27x8x8xf32, #tpu.memory_space<vmem>>, vector<1x1x8x8xf32>
    %91 = vector.shape_cast %90 : vector<1x1x8x8xf32> to vector<8x8xf32>
    %92 = vector.extract_strided_slice %49 {offsets = [0, 22], sizes = [8, 128], strides = [1, 1]} : vector<8x256xf32> to vector<8x128xf32>
    %cst_79 = arith.constant dense<0.000000e+00> : vector<8x128xf32>
    %93 = tpu.matmul %91, %92, %cst_79 {dimension_numbers = #tpu.dot_dimension_numbers<[1], [0], [0], [1], [0, 0, 1, 1], [], []>} : vector<8x8xf32>, vector<8x128xf32>, vector<8x128xf32> -> vector<8x128xf32>
    %94 = arith.addf %89, %93 : vector<8x128xf32>
    %c0_80 = arith.constant 0 : index
    %c0_81 = arith.constant 0 : index
    %c0_82 = arith.constant 0 : index
    %c0_83 = arith.constant 0 : index
    %95 = vector.load %arg5[%c0_80, %c0_81, %c0_82, %c0_83] : memref<1x1x8x256xf32, #tpu.memory_space<vmem>>, vector<1x1x8x256xf32>
    %96 = vector.shape_cast %95 : vector<1x1x8x256xf32> to vector<8x256xf32>
    %c0_84 = arith.constant 0 : index
    %c18 = arith.constant 18 : index
    %c0_85 = arith.constant 0 : index
    %c0_86 = arith.constant 0 : index
    %97 = vector.load %arg2[%c0_84, %c18, %c0_85, %c0_86] : memref<1x27x8x8xf32, #tpu.memory_space<vmem>>, vector<1x1x8x8xf32>
    %98 = vector.shape_cast %97 : vector<1x1x8x8xf32> to vector<8x8xf32>
    %99 = vector.extract_strided_slice %96 {offsets = [0, 0], sizes = [8, 128], strides = [1, 1]} : vector<8x256xf32> to vector<8x128xf32>
    %cst_87 = arith.constant dense<0.000000e+00> : vector<8x128xf32>
    %100 = tpu.matmul %98, %99, %cst_87 {dimension_numbers = #tpu.dot_dimension_numbers<[1], [0], [0], [1], [0, 0, 1, 1], [], []>} : vector<8x8xf32>, vector<8x128xf32>, vector<8x128xf32> -> vector<8x128xf32>
    %101 = arith.addf %94, %100 : vector<8x128xf32>
    %c0_88 = arith.constant 0 : index
    %c19 = arith.constant 19 : index
    %c0_89 = arith.constant 0 : index
    %c0_90 = arith.constant 0 : index
    %102 = vector.load %arg2[%c0_88, %c19, %c0_89, %c0_90] : memref<1x27x8x8xf32, #tpu.memory_space<vmem>>, vector<1x1x8x8xf32>
    %103 = vector.shape_cast %102 : vector<1x1x8x8xf32> to vector<8x8xf32>
    %104 = vector.extract_strided_slice %96 {offsets = [0, 1], sizes = [8, 128], strides = [1, 1]} : vector<8x256xf32> to vector<8x128xf32>
    %cst_91 = arith.constant dense<0.000000e+00> : vector<8x128xf32>
    %105 = tpu.matmul %103, %104, %cst_91 {dimension_numbers = #tpu.dot_dimension_numbers<[1], [0], [0], [1], [0, 0, 1, 1], [], []>} : vector<8x8xf32>, vector<8x128xf32>, vector<8x128xf32> -> vector<8x128xf32>
    %106 = arith.addf %101, %105 : vector<8x128xf32>
    %c0_92 = arith.constant 0 : index
    %c20 = arith.constant 20 : index
    %c0_93 = arith.constant 0 : index
    %c0_94 = arith.constant 0 : index
    %107 = vector.load %arg2[%c0_92, %c20, %c0_93, %c0_94] : memref<1x27x8x8xf32, #tpu.memory_space<vmem>>, vector<1x1x8x8xf32>
    %108 = vector.shape_cast %107 : vector<1x1x8x8xf32> to vector<8x8xf32>
    %109 = vector.extract_strided_slice %96 {offsets = [0, 2], sizes = [8, 128], strides = [1, 1]} : vector<8x256xf32> to vector<8x128xf32>
    %cst_95 = arith.constant dense<0.000000e+00> : vector<8x128xf32>
    %110 = tpu.matmul %108, %109, %cst_95 {dimension_numbers = #tpu.dot_dimension_numbers<[1], [0], [0], [1], [0, 0, 1, 1], [], []>} : vector<8x8xf32>, vector<8x128xf32>, vector<8x128xf32> -> vector<8x128xf32>
    %111 = arith.addf %106, %110 : vector<8x128xf32>
    %c0_96 = arith.constant 0 : index
    %c21 = arith.constant 21 : index
    %c0_97 = arith.constant 0 : index
    %c0_98 = arith.constant 0 : index
    %112 = vector.load %arg2[%c0_96, %c21, %c0_97, %c0_98] : memref<1x27x8x8xf32, #tpu.memory_space<vmem>>, vector<1x1x8x8xf32>
    %113 = vector.shape_cast %112 : vector<1x1x8x8xf32> to vector<8x8xf32>
    %114 = vector.extract_strided_slice %96 {offsets = [0, 10], sizes = [8, 128], strides = [1, 1]} : vector<8x256xf32> to vector<8x128xf32>
    %cst_99 = arith.constant dense<0.000000e+00> : vector<8x128xf32>
    %115 = tpu.matmul %113, %114, %cst_99 {dimension_numbers = #tpu.dot_dimension_numbers<[1], [0], [0], [1], [0, 0, 1, 1], [], []>} : vector<8x8xf32>, vector<8x128xf32>, vector<8x128xf32> -> vector<8x128xf32>
    %116 = arith.addf %111, %115 : vector<8x128xf32>
    %c0_100 = arith.constant 0 : index
    %c22 = arith.constant 22 : index
    %c0_101 = arith.constant 0 : index
    %c0_102 = arith.constant 0 : index
    %117 = vector.load %arg2[%c0_100, %c22, %c0_101, %c0_102] : memref<1x27x8x8xf32, #tpu.memory_space<vmem>>, vector<1x1x8x8xf32>
    %118 = vector.shape_cast %117 : vector<1x1x8x8xf32> to vector<8x8xf32>
    %119 = vector.extract_strided_slice %96 {offsets = [0, 11], sizes = [8, 128], strides = [1, 1]} : vector<8x256xf32> to vector<8x128xf32>
    %cst_103 = arith.constant dense<0.000000e+00> : vector<8x128xf32>
    %120 = tpu.matmul %118, %119, %cst_103 {dimension_numbers = #tpu.dot_dimension_numbers<[1], [0], [0], [1], [0, 0, 1, 1], [], []>} : vector<8x8xf32>, vector<8x128xf32>, vector<8x128xf32> -> vector<8x128xf32>
    %121 = arith.addf %116, %120 : vector<8x128xf32>
    %c0_104 = arith.constant 0 : index
    %c23 = arith.constant 23 : index
    %c0_105 = arith.constant 0 : index
    %c0_106 = arith.constant 0 : index
    %122 = vector.load %arg2[%c0_104, %c23, %c0_105, %c0_106] : memref<1x27x8x8xf32, #tpu.memory_space<vmem>>, vector<1x1x8x8xf32>
    %123 = vector.shape_cast %122 : vector<1x1x8x8xf32> to vector<8x8xf32>
    %124 = vector.extract_strided_slice %96 {offsets = [0, 12], sizes = [8, 128], strides = [1, 1]} : vector<8x256xf32> to vector<8x128xf32>
    %cst_107 = arith.constant dense<0.000000e+00> : vector<8x128xf32>
    %125 = tpu.matmul %123, %124, %cst_107 {dimension_numbers = #tpu.dot_dimension_numbers<[1], [0], [0], [1], [0, 0, 1, 1], [], []>} : vector<8x8xf32>, vector<8x128xf32>, vector<8x128xf32> -> vector<8x128xf32>
    %126 = arith.addf %121, %125 : vector<8x128xf32>
    %c0_108 = arith.constant 0 : index
    %c24 = arith.constant 24 : index
    %c0_109 = arith.constant 0 : index
    %c0_110 = arith.constant 0 : index
    %127 = vector.load %arg2[%c0_108, %c24, %c0_109, %c0_110] : memref<1x27x8x8xf32, #tpu.memory_space<vmem>>, vector<1x1x8x8xf32>
    %128 = vector.shape_cast %127 : vector<1x1x8x8xf32> to vector<8x8xf32>
    %129 = vector.extract_strided_slice %96 {offsets = [0, 20], sizes = [8, 128], strides = [1, 1]} : vector<8x256xf32> to vector<8x128xf32>
    %cst_111 = arith.constant dense<0.000000e+00> : vector<8x128xf32>
    %130 = tpu.matmul %128, %129, %cst_111 {dimension_numbers = #tpu.dot_dimension_numbers<[1], [0], [0], [1], [0, 0, 1, 1], [], []>} : vector<8x8xf32>, vector<8x128xf32>, vector<8x128xf32> -> vector<8x128xf32>
    %131 = arith.addf %126, %130 : vector<8x128xf32>
    %c0_112 = arith.constant 0 : index
    %c25 = arith.constant 25 : index
    %c0_113 = arith.constant 0 : index
    %c0_114 = arith.constant 0 : index
    %132 = vector.load %arg2[%c0_112, %c25, %c0_113, %c0_114] : memref<1x27x8x8xf32, #tpu.memory_space<vmem>>, vector<1x1x8x8xf32>
    %133 = vector.shape_cast %132 : vector<1x1x8x8xf32> to vector<8x8xf32>
    %134 = vector.extract_strided_slice %96 {offsets = [0, 21], sizes = [8, 128], strides = [1, 1]} : vector<8x256xf32> to vector<8x128xf32>
    %cst_115 = arith.constant dense<0.000000e+00> : vector<8x128xf32>
    %135 = tpu.matmul %133, %134, %cst_115 {dimension_numbers = #tpu.dot_dimension_numbers<[1], [0], [0], [1], [0, 0, 1, 1], [], []>} : vector<8x8xf32>, vector<8x128xf32>, vector<8x128xf32> -> vector<8x128xf32>
    %136 = arith.addf %131, %135 : vector<8x128xf32>
    %c0_116 = arith.constant 0 : index
    %c26 = arith.constant 26 : index
    %c0_117 = arith.constant 0 : index
    %c0_118 = arith.constant 0 : index
    %137 = vector.load %arg2[%c0_116, %c26, %c0_117, %c0_118] : memref<1x27x8x8xf32, #tpu.memory_space<vmem>>, vector<1x1x8x8xf32>
    %138 = vector.shape_cast %137 : vector<1x1x8x8xf32> to vector<8x8xf32>
    %139 = vector.extract_strided_slice %96 {offsets = [0, 22], sizes = [8, 128], strides = [1, 1]} : vector<8x256xf32> to vector<8x128xf32>
    %cst_119 = arith.constant dense<0.000000e+00> : vector<8x128xf32>
    %140 = tpu.matmul %138, %139, %cst_119 {dimension_numbers = #tpu.dot_dimension_numbers<[1], [0], [0], [1], [0, 0, 1, 1], [], []>} : vector<8x8xf32>, vector<8x128xf32>, vector<8x128xf32> -> vector<8x128xf32>
    %141 = arith.addf %136, %140 : vector<8x128xf32>
    %c0_120 = arith.constant 0 : index
    %c0_121 = arith.constant 0 : index
    %c0_122 = arith.constant 0 : index
    %c0_123 = arith.constant 0 : index
    %142 = vector.load %arg6[%c0_120, %c0_121, %c0_122, %c0_123] : memref<1x1x8x128xf32, #tpu.memory_space<vmem>>, vector<1x1x8x128xf32>
    %143 = vector.shape_cast %142 : vector<1x1x8x128xf32> to vector<8x128xf32>
    %144 = vector.shape_cast %141 : vector<8x128xf32> to vector<1x1x8x128xf32>
    tpu.vector_store %arg6[%c0_120, %c0_121, %c0_122, %c0_123], %144 {strides = array<i32>} : memref<1x1x8x128xf32, #tpu.memory_space<vmem>>, vector<1x1x8x128xf32>,
    return
  }
  func.func @transform_0(%arg0: i32, %arg1: i32) -> (i32, i32, i32, i32) {
    %c0_i32 = arith.constant 0 : i32
    %c0_i32_0 = arith.constant 0 : i32
    %c0_i32_1 = arith.constant 0 : i32
    %c0_i32_2 = arith.constant 0 : i32
    return %arg0, %c0_i32, %c0_i32_0, %c0_i32_1 : i32, i32, i32, i32
  }
  func.func @transform_1(%arg0: i32, %arg1: i32) -> (i32, i32, i32, i32) {
    %c0_i32 = arith.constant 0 : i32
    %0 = arith.addi %arg1, %c0_i32 : i32
    %c0_i32_0 = arith.constant 0 : i32
    %c0_i32_1 = arith.constant 0 : i32
    %c0_i32_2 = arith.constant 0 : i32
    return %arg0, %0, %c0_i32_0, %c0_i32_1 : i32, i32, i32, i32
  }
  func.func @transform_2(%arg0: i32, %arg1: i32) -> (i32, i32, i32, i32) {
    %c1_i32 = arith.constant 1 : i32
    %0 = arith.addi %arg1, %c1_i32 : i32
    %c0_i32 = arith.constant 0 : i32
    %c0_i32_0 = arith.constant 0 : i32
    %c0_i32_1 = arith.constant 0 : i32
    return %arg0, %0, %c0_i32, %c0_i32_0 : i32, i32, i32, i32
  }
  func.func @transform_3(%arg0: i32, %arg1: i32) -> (i32, i32, i32, i32) {
    %c2_i32 = arith.constant 2 : i32
    %0 = arith.addi %arg1, %c2_i32 : i32
    %c0_i32 = arith.constant 0 : i32
    %c0_i32_0 = arith.constant 0 : i32
    %c0_i32_1 = arith.constant 0 : i32
    return %arg0, %0, %c0_i32, %c0_i32_0 : i32, i32, i32, i32
  }
  func.func @transform_4(%arg0: i32, %arg1: i32) -> (i32, i32, i32, i32) {
    %c0_i32 = arith.constant 0 : i32
    %c0_i32_0 = arith.constant 0 : i32
    %c0_i32_1 = arith.constant 0 : i32
    return %arg0, %arg1, %c0_i32, %c0_i32_0 : i32, i32, i32, i32
  }
}

</mosaic_0001>

<bundles_post_ra>
// kernel: tpu_custom_call.1
= control target key start
LH: loop header
LB: loop body
LE: loop exit
PB: predicated region body
PF: predicated region fallthrough
CT: control target
= control target key end

     0   :  { %s4035_s0 = inlined_call_operand.vmem [shape: f32[2,27,8,8], index: 0, kind: input, shape index: {}]   ;;  %s4036_s1 = inlined_call_operand.vmem [shape: f32[2,10,8,256], index: 1, kind: input, shape index: {}]   ;;  %s4037_s2 = inlined_call_operand.hbm [shape: f32[2,10,8,256], index: 2, kind: input, shape index: {}]   ;;  %s4038_s3 = inlined_call_operand.hbm [shape: f32[2,10,8,256], index: 3, kind: input, shape index: {}]   ;;  %s4039_s4 = inlined_call_operand.hbm [shape: f32[2,8,8,128], index: 4, kind: output, shape index: {}]  }
   0x1   :  { %4055 = sst [smem:[#allocation17_spill]] %s4035_s0 }
   0x2   :  { %4056 = sst [smem:[#allocation18_spill]] %s4036_s1 }
   0x3   :  { %4057 = sst [smem:[#allocation19_spill]] %s4037_s2 }
   0x4   :  { %4058 = sst [smem:[#allocation20_spill]] %s4039_s4 }
   0x5   :  { %9 = vsyncpa [#allocation3], 0 }
   0x6   :  { %11 = vsyncpa [#allocation3 + $0x1], 0 }
   0x7   :  { %12 = vsyncpa [#allocation6], 0 }
   0x8   :  { %14 = vsyncpa [#allocation6 + $0x1], 0 }
   0x9   :  { %15 = vsyncpa [#allocation4], 0 }
   0xa   :  { %17 = vsyncpa [#allocation4 + $0x1], 0  ;;  %s3424_s15 = smov 0   ;;  %s3426_s16 = smov 0  }
   0xb   :  { %s3428_s17 = smov 0   ;;  %s3430_s18 = smov 0  }
   0xc   :  { %s3432_s19 = smov 0   ;;  %s3434_s20 = smov 0  }
   0xd   :  { %s3436_s21 = smov 0   ;;  %s3438_s22 = smov 0  }
   0xe   :  { %s3440_s23 = smov 0   ;;  %s3442_s24 = smov 0  }
   0xf   :  { %s3444_s25 = smov 0   ;;  %s3446_s26 = smov 0  }
  0x10   :  { %s3448_s27 = smov 0   ;;  %s3450_s28 = smov 0  }
  0x11 LB: > { %4059 = sst [smem:[#allocation11_spill]] %s3368_s24  ;;  %s4040_s29 = sadd.s32 4294967295, %s3384_s28   ;;  %s3384_s28 = sphi %s3450_s28, %s23_s28   ;;  %s3380_s27 = sphi %s3448_s27, %s4108_s27   ;;  %s3376_s26 = sphi %s3446_s26, %s4096_s26   ;;  %s3372_s25 = sphi %s3444_s25, %s4095_s25   ;;  %s3368_s24 = sphi %s3442_s24, %s4094_s24   ;;  %s3364_s23 = sphi %s3440_s23, %s4107_s23   ;;  %s3360_s22 = sphi %s3438_s22, %s4106_s22   ;;  %s3356_s21 = sphi %s3436_s21, %s4105_s21   ;;  %s3352_s20 = sphi %s3434_s20, %s4104_s20   ;;  %s3348_s19 = sphi %s3432_s19, %s4103_s19   ;;  %s3344_s18 = sphi %s3430_s18, %s4102_s18   ;;  %s3340_s17 = sphi %s3428_s17, %s4101_s17   ;;  %s3336_s16 = sphi %s3426_s16, %s4100_s16   ;;  %s3332_s15 = sphi %s3424_s15, %s4099_s15  }
  0x12   : > { %4060 = sst [smem:[#allocation12_spill]] %s3372_s25  ;;  %s32_s5 = sadd.s32 1, %s3376_s26 }
  0x13   : > { %4061 = sst [smem:[#allocation13_spill]] %s3376_s26  ;;  %s35_s6 = sadd.s32 1, %s3380_s27 }
  0x14   : > { %4062 = sst [smem:[#allocation14_spill]] %s3380_s27  ;;  %p33_p0 = scmp.ge.s32.totalorder %s32_s5, 8 }
  0x15   : > { %s100_s7 = sadd.s32 1, %s3364_s23  ;;  %p107_p1 = scmp.ne.s32.totalorder %s3364_s23, %s3360_s22 }
  0x16   : > { %p4050_p2 = scmp.eq.s32.totalorder %s3384_s28, 0  ;;  %s4110_s6 = smov (!%p33_p0, %s35_s6), %s3380_s27 }
  0x17   : > { %s3500_s8 = scalar_select %p33_p0, 0, %s32_s5  }
  0x18   : > { %p3506_p3 = por %p4050_p2, %p107_p1  ;;  %p37_p4 = scmp.ge.s32.totalorder %s4110_s6, 2 }
  0x19   : > { %4063 = sst [smem:[#allocation15_spill]] %s3500_s8  ;;  %s94_s9 = sadd.s32 1, %s3500_s8 }
  0x1a   : > { %s96_s11 = ssub.s32 %s32_s5, %s94_s9  ;;  %p113_p5 = scmp.ne.s32.totalorder %s3360_s22, %s3356_s21 }
  0x1b   : > { %p3513_p6 = scmp.eq.s32.totalorder %s4040_s29, 0  ;;  %s4112_s6 = smov (%p37_p4, %s4110_s6), 0 }
  0x1c   : > { %4066 = sst [smem:[#allocation16_spill]] %s4112_s6  ;;  %s123_s14 = sadd.s32 2, %s3376_s26 }
  0x1d   : > { %s4065_s12 = scalar_select %p3513_p6, 1, 0 }
  0x1e   : > { %p3521_p7 = por %p3513_p6, %p113_p5  ;;  %s95_s21 = ssub.s32 %s3380_s27, %s4112_s6 }
  0x1f   : > { %s124_s5 = sadd.s32 2, %s3500_s8  ;;  %s97_s9 = sor.u32 %s96_s11, %s95_s21 }
  0x20   : > { %s4067_s13 = scalar_select %p3521_p7, 1, 0 }
  0x21   : > { %s126_s30 = ssub.s32 %s123_s14, %s124_s5  ;;  %p98_p8 = scmp.eq.s32.totalorder %s97_s9, 0 }
  0x22   : > { %s127_s29 = sor.u32 %s126_s30, %s95_s21  ;;  %s154_s0 = ssub.s32 %s3376_s26, %s3500_s8 }
  0x23   : > { %p3529_p9 = scmp.eq.s32.totalorder %s127_s29, 0  ;;  %s155_s24 = sor.u32 %s154_s0, %s95_s21 }
  0x24   : > { %s3536_s1 = scalar_select %p98_p8, %s3364_s23, %s100_s7  }
  0x25   : > { %s158_s25 = sadd.s32 1, %s3340_s17  ;;  %p156_p10 = scmp.eq.s32.totalorder %s155_s24, 0 }
  0x26   : > { %p168_p11 = scmp.ne.s32.totalorder %s3340_s17, %s3336_s16  ;;  %s4069_s11 = sadd.s32 4294967295, %s3384_s28  }
  0x27   : > { %p169_p12 = scmp.eq.s32.totalorder %s4069_s11, 15  ;;  %p174_p13 = scmp.ne.s32.totalorder %s3336_s16, %s3332_s15 }
  0x28   : > { %s3546_s30 = scalar_select %p156_p10, %s3340_s17, %s158_s25  }
  0x29   : > { %p3548_p0 = por %p169_p12, %p168_p11  ;;  %s4071_s14 = sadd.s32 4294967294, %s3384_s28  }
  0x2a   : > { %p175_p1 = scmp.eq.s32.totalorder %s4071_s14, 15  ;;  %p4049_p4 = scmp.lt.s32.totalorder %s3384_s28, 16 }
  0x2b   : > { %s4070_s29 = scalar_select %p3548_p0, 1, 0 }
  0x2c   : > { %p3555_p5 = por %p175_p1, %p174_p13  ;;  %s215_s24 = sand.u32 1, %s3364_s23  }
  0x2d   : > { %s2718_s7 = sshll.u32 %s215_s24, 4  ;;  %s2719_s21 = sshll.u32 %s3376_s26, 1 }
  0x2e   : > { %s4072_s0 = scalar_select %p3555_p5, 1, 0 }
  0x2f   : > { %s2605_s5 = smul.u32 20, %s3380_s27  ;;  %s219_s9 = scalar_lea.vmem [#allocation2], %s2718_s7 }
  0x30   : > { %s230_s11 = sshll.u32 %s219_s9, 4  ;;  %p3568_p8 = pnand %p4049_p4, %p3506_p3  ;;  %s3562_s11 = int_to_ptr.vmem [resolvable:$true] %s230_s11 }
  0x31   : > { %s3572_s14 = sadd.s32 %s2719_s21, %s2605_s5  ;;  %s4074_s2 = sld [smem:[#allocation19_spill]] }
  0x32   : > { %s4048_s6 = sshll.u32 %s3572_s14, 7  ;;  %s216_s27 = scalar_lea.sflag [#allocation3], %s215_s24 }
  0x33   : > { %p3174_p12 = pneg %p3568_p8 }
  0x37   : > { %s2608_s9 = scalar_lea.hbm %s4074_s2, %s4048_s6  ;;  %s3177_s8 = scalar_lea.hbm %s4074_s2, 5120 }
  0x38   : > { %s3582_s10 = scalar_lea.hbm %s2608_s9, 256  ;;  %s3202_s26 = scalar_lea.hbm %s2608_s9, 512 }
  0x39   : > { %p3173_p3 = scmp.ne.s32.totalorder %s3582_s10, %s3202_s26  ;;  %p3178_p4 = scmp.lt.u32.totalorder %s3582_s10, %s4074_s2 }
  0x3a   : > { %p3179_p2 = scmp.lt.u32.totalorder %s3177_s8, %s3202_s26  ;;  %p3181_p11 = scmp.lt.u32.totalorder %s3202_s26, %s3582_s10 }
  0x3b   : > { %p3175_p13 = pnand %p3174_p12, %p3173_p3 }
  0x3c   : > { %p3180_p10 = por %p3179_p2, %p3178_p4 }
  0x3d   : > { %p3176_p1 = pneg %p3175_p13 }
  0x3e   : > { %p3182_p5 = por %p3181_p11, %p3180_p10 }
  0x40   : > { %p3183_p0 = pnand %p3182_p5, %p3176_p1 }
  0x42   : > { %3186 = shalt.err (!%p3183_p0)
}
  0x43   : > { %s3187_s24 = scalar_lea.vmem %s3562_s11, 256  ;;  %s3386_s9 = smov [#allocation2]  }
  0x44   : > { %p3188_p3 = scmp.ne.s32.totalorder %s3562_s11, %s3187_s24  ;;  %s3192_s21 = sshll.u32 %s3386_s9, 4  ;;  %s3193_s21 = int_to_ptr.vmem [resolvable:$false] %s3192_s21 }
  0x45   : > { %s3194_s6 = scalar_lea.vmem %s3193_s21, 512  ;;  %p3195_p6 = scmp.lt.s32.totalorder %s3562_s11, %s3193_s21 }
  0x46   : > { %p3190_p13 = pnand %p3188_p3, %p3174_p12  ;;  %p3196_p2 = scmp.lt.s32.totalorder %s3194_s6, %s3187_s24 }
  0x48   : > { %p3191_p7 = pneg %p3190_p13  ;;  %p3197_p4 = por %p3196_p2, %p3195_p6 }
  0x4a   : > { %p3198_p10 = pnand %p3197_p4, %p3191_p7 }
  0x4c   : > { %3201 = shalt.err (!%p3198_p10)
}
  0x4d   : > { %3040 = dma.hbm_to_vmem [thread:$0]  (!%p3568_p8), %s3582_s10, 256, %s3562_s11, %s216_s27  }
  0x4e   : > { %p4075_p6 = scmp.lt.s32.totalorder %s3384_s28, 17  ;;  %p4076_p7 = scmp.ge.s32.totalorder %s3384_s28, 1 }
  0x4f   : > { %s130_s25 = sadd.s32 1, %s3352_s20  ;;  %p137_p5 = scmp.ne.s32.totalorder %s3352_s20, %s3348_s19 }
  0x50   : > { %p3612_p0 = pnand %p4076_p7, %p4075_p6  ;;  %p4078_p11 = scmp.eq.s32.totalorder %s3384_s28, 0 }
  0x51   : > { %s3622_s5 = scalar_select %p3529_p9, %s3352_s20, %s130_s25  }
  0x52   : > { %p139_p12 = por %p137_p5, %p4078_p11  ;;  %p143_p1 = scmp.ne.s32.totalorder %s3348_s19, %s3344_s18 }
  0x53   : > { %s237_s8 = sand.u32 1, %s3352_s20   ;;  %s4079_s7 = sshll.u32 %s3572_s14, 7 }
  0x54   : > { %s2617_s27 = scalar_lea.hbm %s4038_s3, %s4079_s7  ;;  %p4080_p8 = scmp.ne.s32.totalorder %s4065_s12, 0 }
  0x55   : > { %s2721_s10 = sshll.u32 %s237_s8, 4  ;;  %s3640_s21 = scalar_lea.hbm %s2617_s27, 512 }
  0x56   : > { %p3636_p3 = por %p143_p1, %p4080_p8  ;;  %p4082_p13 = scmp.lt.s32.totalorder %s3384_s28, 16 }
  0x57   : > { %s241_s18 = scalar_lea.vmem [#allocation5], %s2721_s10  ;;  %s238_s12 = scalar_lea.sflag [#allocation6], %s237_s8 }
  0x58   : > { %s4081_s11 = scalar_select %p3636_p3, 1, 0 }
  0x59   : > { %p3644_p9 = pnand %p4082_p13, %p139_p12  ;;  %s252_s14 = sshll.u32 %s241_s18, 4  ;;  %s3648_s14 = int_to_ptr.vmem [resolvable:$true] %s252_s14 }
  0x5a   : > { %s3233_s6 = scalar_lea.hbm %s2617_s27, 768  ;;  %s3208_s24 = scalar_lea.hbm %s4038_s3, 5120 }
  0x5b   : > { %p3204_p2 = scmp.ne.s32.totalorder %s3640_s21, %s3233_s6  ;;  %p3205_p4 = pneg %p3644_p9 }
  0x5c   : > { %p3209_p7 = scmp.lt.u32.totalorder %s3640_s21, %s4038_s3  ;;  %p3210_p5 = scmp.lt.u32.totalorder %s3208_s24, %s3233_s6 }
  0x5d   : > { %p3206_p10 = pnand %p3205_p4, %p3204_p2  ;;  %p3212_p12 = scmp.lt.u32.totalorder %s3233_s6, %s3640_s21 }
  0x5e   : > { %p3211_p11 = por %p3210_p5, %p3209_p7 }
  0x5f   : > { %p3207_p6 = pneg %p3206_p10 }
  0x60   : > { %p3213_p1 = por %p3212_p12, %p3211_p11 }
  0x62   : > { %p3214_p8 = pnand %p3213_p1, %p3207_p6 }
  0x64   : > { %3217 = shalt.err (!%p3214_p8)
}
  0x65   : > { %s3218_s8 = scalar_lea.vmem %s3648_s14, 256  ;;  %s3387_s27 = smov [#allocation5]  }
  0x66   : > { %p3219_p13 = scmp.ne.s32.totalorder %s3648_s14, %s3218_s8  ;;  %s3223_s10 = sshll.u32 %s3387_s27, 4  ;;  %s3224_s10 = int_to_ptr.vmem [resolvable:$false] %s3223_s10 }
  0x67   : > { %s3225_s2 = scalar_lea.vmem %s3224_s10, 512  ;;  %p3226_p3 = scmp.lt.s32.totalorder %s3648_s14, %s3224_s10 }
  0x68   : > { %p3221_p2 = pnand %p3219_p13, %p3205_p4  ;;  %p3227_p7 = scmp.lt.s32.totalorder %s3225_s2, %s3218_s8 }
  0x6a   : > { %p3222_p10 = pneg %p3221_p2  ;;  %p3228_p5 = por %p3227_p7, %p3226_p3 }
  0x6c   : > { %p3229_p11 = pnand %p3228_p5, %p3222_p10 }
  0x6e   : > { %3232 = shalt.err (!%p3229_p11)
}
  0x6f   : > { %3043 = dma.hbm_to_vmem [thread:$0]  (!%p3644_p9), %s3640_s21, 256, %s3648_s14, %s238_s12  }
  0x70   : > { %261 = sbr.rel (%p3612_p0) target bundleno = 589 (0x24d), region = 36  ;;  %s263_s18 = sand.u32 (!%p3612_p0), 1, %s3360_s22  }
  0x71   : > { %s3677_s6 = sshll.u32 (!%p3612_p0), %s263_s18, 4  ;;  %s264_s25 = scalar_lea.sflag (!%p3612_p0), [#allocation3], %s263_s18 }
  0x72   : > { %s267_s7 = scalar_lea.vmem (!%p3612_p0), [#allocation2], %s3677_s6  ;;  %p4084_p4 = scmp.ne.s32.totalorder (!%p3612_p0), %s4067_s13, 0 }
  0x77   : > { %3319 = dma.done.wait (%p4084_p4), %s264_s25, 256  }
  0x78   : > { %3321 = vsyncadd (%p4084_p4), %s264_s25, 4294967040  ;;  %s272_s4 = sand.u32 1, %s3348_s19   ;;  %p4085_p0 = scmp.ne.s32.totalorder %s4081_s11, 0 }
  0x79   : > { %s3685_s21 = sshll.u32 %s272_s4, 4  ;;  %s273_s26 = scalar_lea.sflag [#allocation6], %s272_s4 }
  0x7a   : > { %s276_s14 = scalar_lea.vmem [#allocation5], %s3685_s21 }
  0x7b   : > { %3323 = dma.done.wait (%p4085_p0), %s273_s26, 256  }
  0x7c   : > { %3325 = vsyncadd (%p4085_p0), %s273_s26, 4294967040  ;;  %s4086_s12 = sld [smem:[#allocation12_spill]]  ;;  %s4087_s24 = sld [smem:[#allocation11_spill]]  ;;  %v3388_v0 = vmov 0.0   ;;  %vm3389_vm0 = vmmov 0   ;;  %v3705_v1 = vld [vmem:[%s267_s7] sm:$0xff] }
  0x7d   : > { %2908 = vmatprep.subr.mxu0 %v3388_v0  ;;  %2910 = vmatprep.mubr.msk.f32.mxu0 %vm3389_vm0, %v3388_v0  ;;  %s3390_s10 = smov 117   ;;  %s4088_s25 = sld [smem:[#allocation18_spill]]  ;;  %v1079_v2 = vld [vmem:[%s267_s7 + $0x8] sm:$0xff]  ;;  %v3743_v5 = vld [vmem:[%s276_s14] sm:$0xff]  ;;  %vm669_vm1 = vcmask 957440   ;;  %vm350_vm2 = vcmask 64512  }
  0x7e   : > { %2843 = vmatprep.subr.mxu1 %v3388_v0  ;;  %2845 = vmatprep.mubr.msk.f32.mxu1 %vm3389_vm0, %v3388_v0  ;;  %s3391_s26 = smov 127   ;;  %s3394_s7 = smov 126   ;;  %v1815_v6 = vld [vmem:[%s276_s14 + $0x8] sm:$0xff]  ;;  %vm347_vm3 = vcmask 1039360   ;;  %vm752_vm4 = vcmask 949248   ;;  %vm835_vm5 = vcmask 883712  }
  0x7f   : > { %1406 = vrot.lane.b32.xlu0 %v3705_v1, %s3390_s10  ;;  %s4089_s18 = sld [smem:[#allocation17_spill]]  ;;  %vm503_vm6 = vcmask 1031168   ;;  %vm918_vm7 = vcmask 875520   ;;  %vm586_vm8 = vcmask 965632   ;;  %vm1001_vm9 = vcmask 867328   ;;  %p4091_p12 = scmp.ne.s32.totalorder %s4070_s29, 0 }
  0x80   : > { %s3398_s14 = smov [#allocation7]  }
  0x82   : > { %p320_p3 = scmp.lt.s32.totalorder %s4086_s12, 1  ;;  %p327_p9 = scmp.lt.s32.totalorder %s4087_s24, 9 }
  0x83   : > { %1408 = vrot.lane.b32.xlu0 %v1079_v2, %s3390_s10 }
  0x84   : > { %s3698_s13 = scalar_select %p320_p3, %s4086_s12, 1 }
  0x85   : > { %s328_s11 = scalar_select %p327_p9, %s4087_s24, 9 }
  0x86   : > { %s3030_s8 = smul.u32 20, %s3698_s13 }
  0x87   : > { %s2729_s9 = sshll.u32 %s328_s11, 1  ;;  %s3392_s11 = smov 116  }
  0x88   : > { %s331_s27 = sadd.s32 %s3030_s8, %s2729_s9  ;;  %1488 = vrot.lane.b32.xlu0 %v3705_v1, %s3392_s11  ;;  %s3393_s9 = smov 108  }
  0x89   : > { %s2730_s2 = sshll.u32 %s331_s27, 3  ;;  %s3395_s8 = smov 107  }
  0x8a   : > { %s333_s4 = scalar_lea.vmem %s4088_s25, %s2730_s2  ;;  %s3396_s27 = smov 118  }
  0x8b   : > { %v3712_v3 = vld [vmem:[%s333_s4] sm:$0xff]  ;;  %v337_v4 = vld [vmem:[%s333_s4 + $0x8] sm:$0xff]  ;;  %s3397_s2 = smov 106   ;;  %s3029_s21 = smul.u32 216, %s3698_s13 }
  0x8c   : > { %343 = vrot.lane.b32.xlu1 %v3712_v3, %s3391_s26  ;;  %1570 = vrot.lane.b32.xlu0 %v3705_v1, %s3393_s9  ;;  %s317_s13 = sand.u32 1, %s3336_s16   ;;  %s2785_s4 = sshll.u32 %s4086_s12, 3 }
  0x8d   : > { %s3794_s6 = scalar_lea.vmem %s4089_s18, %s3029_s21  ;;  %s2727_s25 = sshll.u32 %s317_s13, 3 }
  0x8e   : > { %v2756_v10 = vld [vmem:[%s3794_s6 + $0x68] sm:$0xff]  ;;  %v2758_v18 = vld [vmem:[%s3794_s6 + $0x70] sm:$0xff]  ;;  %v338_v20 = vld [vmem:[%s3794_s6] sm:$0xff]  ;;  %s2552_s12 = scalar_lea.sflag [#allocation4], %s317_s13 }
  0x8f   : > { %v2731_v13 = vld [vmem:[%s3794_s6 + $0x8] sm:$0xff]  ;;  %v2760_v26 = vld [vmem:[%s3794_s6 + $0x78] sm:$0xff]  ;;  %v2734_v28 = vld [vmem:[%s3794_s6 + $0x10] sm:$0xff] }
  0x90   : > { %345 = vrot.lane.b32.xlu1 %v337_v4, %s3391_s26  ;;  %499 = vrot.lane.b32.xlu0 %v3712_v3, %s3394_s7  ;;  %v2762_v34 = vld [vmem:[%s3794_s6 + $0x80] sm:$0xff]  ;;  %v2736_v36 = vld [vmem:[%s3794_s6 + $0x18] sm:$0xff] }
  0x91   : > { %v2764_v42 = vld [vmem:[%s3794_s6 + $0x88] sm:$0xff]  ;;  %v2738_v44 = vld [vmem:[%s3794_s6 + $0x20] sm:$0xff]  ;;  %v2766_v49 = vld [vmem:[%s3794_s6 + $0x90] sm:$0xff] }
  0x92   : > { %v2740_v52 = vld [vmem:[%s3794_s6 + $0x28] sm:$0xff]  ;;  %v2768_v57 = vld [vmem:[%s3794_s6 + $0x98] sm:$0xff]  ;;  %v2742_v60 = vld [vmem:[%s3794_s6 + $0x30] sm:$0xff] }
  0x94   : > { %1490 = vrot.lane.b32.xlu1 %v1079_v2, %s3392_s11  ;;  %1652 = vrot.lane.b32.xlu0 %v3705_v1, %s3395_s8 }
  0x98   : > { %1572 = vrot.lane.b32.xlu1 %v1079_v2, %s3393_s9  ;;  %582 = vrot.lane.b32.xlu0 %v3712_v3, %s3396_s27 }
  0x9c   : > { %501 = vrot.lane.b32.xlu1 %v337_v4, %s3394_s7  ;;  %1734 = vrot.lane.b32.xlu0 %v3705_v1, %s3397_s2 }
  0xa0   : > { %1654 = vrot.lane.b32.xlu1 %v1079_v2, %s3395_s8  ;;  %665 = vrot.lane.b32.xlu0 %v3712_v3, %s3390_s10 }
  0xa4   : > { %584 = vrot.lane.b32.xlu1 %v337_v4, %s3396_s27  ;;  %748 = vrot.lane.b32.xlu0 %v3712_v3, %s3392_s11 }
  0xa8   : > { %1736 = vrot.lane.b32.xlu1 %v1079_v2, %s3397_s2  ;;  %1896 = vrot.lane.b32.xlu0 %v3743_v5, %s3391_s26 }
  0xac   : > { %667 = vrot.lane.b32.xlu1 %v337_v4, %s3390_s10  ;;  %831 = vrot.lane.b32.xlu0 %v3712_v3, %s3393_s9 }
  0xb0   : > { %750 = vrot.lane.b32.xlu1 %v337_v4, %s3392_s11  ;;  %1978 = vrot.lane.b32.xlu0 %v3743_v5, %s3394_s7 }
  0xb4   : > { %1898 = vrot.lane.b32.xlu1 %v1815_v6, %s3391_s26  ;;  %914 = vrot.lane.b32.xlu0 %v3712_v3, %s3395_s8 }
  0xb8   : > { %833 = vrot.lane.b32.xlu1 %v337_v4, %s3393_s9  ;;  %2060 = vrot.lane.b32.xlu0 %v3743_v5, %s3396_s27 }
  0xbc   : > { %1980 = vrot.lane.b32.xlu1 %v1815_v6, %s3394_s7  ;;  %997 = vrot.lane.b32.xlu0 %v3712_v3, %s3397_s2 }
  0xc0   : > { %916 = vrot.lane.b32.xlu1 %v337_v4, %s3395_s8  ;;  %2142 = vrot.lane.b32.xlu0 %v3743_v5, %s3390_s10 }
  0xc4   : > { %2062 = vrot.lane.b32.xlu1 %v1815_v6, %s3396_s27  ;;  %2224 = vrot.lane.b32.xlu0 %v3743_v5, %s3392_s11 }
  0xc8   : > { %999 = vrot.lane.b32.xlu1 %v337_v4, %s3397_s2  ;;  %1160 = vrot.lane.b32.xlu0 %v3705_v1, %s3391_s26 }
  0xcc   : > { %2144 = vrot.lane.b32.xlu1 %v1815_v6, %s3390_s10  ;;  %2306 = vrot.lane.b32.xlu0 %v3743_v5, %s3393_s9  ;;  %s3238_s10 = sshll.u32 %s3398_s14, 4  ;;  %s3239_s10 = int_to_ptr.vmem [resolvable:$false] %s3238_s10 }
  0xcd   : > { %s3240_s18 = scalar_lea.vmem %s3239_s10, 256 }
  0xd0   : > { %2226 = vrot.lane.b32.xlu1 %v1815_v6, %s3392_s11  ;;  %1242 = vrot.lane.b32.xlu0 %v3705_v1, %s3394_s7 }
  0xd4   : > { %1162 = vrot.lane.b32.xlu1 %v1079_v2, %s3391_s26  ;;  %2388 = vrot.lane.b32.xlu0 %v3743_v5, %s3395_s8  ;;  %s2563_s26 = sadd.s32 %s4087_s24, %s2785_s4 }
  0xd5   : > { %s2786_s11 = sshll.u32 %s2563_s26, 7 }
  0xd8   : > { %2308 = vrot.lane.b32.xlu1 %v1815_v6, %s3393_s9  ;;  %1324 = vrot.lane.b32.xlu0 %v3705_v1, %s3396_s27  ;;  %s319_s9 = scalar_lea.vmem [#allocation7], %s2727_s25 }
  0xdc   : > { %1244 = vrot.lane.b32.xlu1 %v1079_v2, %s3394_s7  ;;  %2470 = vrot.lane.b32.xlu0 %v3743_v5, %s3397_s2  ;;  %s2567_s7 = sshll.u32 %s319_s9, 4  ;;  %s3960_s7 = int_to_ptr.vmem [resolvable:$true] %s2567_s7 }
  0xdd   : > { %s3234_s24 = scalar_lea.vmem %s3960_s7, 128  ;;  %p3241_p13 = scmp.lt.s32.totalorder %s3960_s7, %s3239_s10 }
  0xde   : > { %p3235_p6 = scmp.ne.s32.totalorder %s3960_s7, %s3234_s24  ;;  %p3242_p2 = scmp.lt.s32.totalorder %s3240_s18, %s3234_s24 }
  0xe0   : > { %2390 = vrot.lane.b32.xlu1 %v1815_v6, %s3395_s8  ;;  %p3236_p1 = pnand %p3235_p6, %p4091_p12  ;;  %p3243_p10 = por %p3242_p2, %p3241_p13 }
  0xe2   : > { %p3237_p8 = pneg %p3236_p1 }
  0xe4   : > { %1326 = vrot.lane.b32.xlu1 %v1079_v2, %s3396_s27  ;;  %p3244_p7 = pnand %p3243_p10, %p3237_p8 }
  0xe8   : > { %2472 = vrot.lane.b32.xlu1 %v1815_v6, %s3397_s2  ;;  %v2744_v6 = vld [vmem:[%s3794_s6 + $0x38] sm:$0xff]  ;;  %s4090_s2 = sld [smem:[#allocation20_spill]] }
  0xee   : > { %s3958_s21 = scalar_lea.hbm %s4090_s2, %s2786_s11 }
  0xf1   : > { %v1407_v7 = vpop.permute.xlu0 %1406 }
  0xf5   : > { %v1409_v9 = vpop.permute.xlu0 %1408 }
  0xf6   : > { %v1410_v11 = vsel %vm669_vm1, %v1407_v7, %v1409_v9 }
  0xf7   : > { %2909 = vmatpush3.msra.mxu0 %v1410_v11  ;;  %v2772_v11 = vld [vmem:[%s3794_s6 + $0xa8] sm:$0xff] }
  0xf8   : > { %2911 = vmatmul.mubr.msk.f32.vlgmr.msra.gmra.mrb[0].mxu0 %vm350_vm2, %v2756_v10  ;;  %2913 = vmatprep.subr.mxu0 %v3388_v0 }
  0xf9   : > { %2915 = vmatprep.mubr.msk.f32.mxu0 %vm3389_vm0, %v3388_v0 }
  0xfa   : > { %v1489_v15 = vpop.permute.xlu0 %1488 }
  0xfe   : > { %v344_v8 = vpop.permute.xlu1 %343  ;;  %v1571_v19 = vpop.permute.xlu0 %1570 }
 0x102   : > { %v346_v12 = vpop.permute.xlu1 %345  ;;  %v500_v23 = vpop.permute.xlu0 %499 }
 0x103   : > { %v348_v14 = vsel %vm347_vm3, %v344_v8, %v346_v12 }
 0x104   : > { %2844 = vmatpush3.msra.mxu1 %v348_v14  ;;  %v2746_v14 = vld [vmem:[%s3794_s6 + $0x40] sm:$0xff] }
 0x105   : > { %2846 = vmatmul.mubr.msk.f32.vlgmr.msra.gmra.mrb[0].mxu1 %vm350_vm2, %v2731_v13  ;;  %2848 = vmatprep.subr.mxu1 %v3388_v0 }
 0x106   : > { %v1491_v16 = vpop.permute.xlu1 %1490  ;;  %2849 = vmatpush3.msra.mxu1 %v3712_v3  ;;  %2850 = vmatprep.mubr.msk.f32.mxu1 %vm3389_vm0, %v3388_v0  ;;  %v1653_v27 = vpop.permute.xlu0 %1652  ;;  %v2770_v3 = vld [vmem:[%s3794_s6 + $0xa0] sm:$0xff] }
 0x107   : > { %v1492_v17 = vsel %vm752_vm4, %v1489_v15, %v1491_v16  ;;  %2853 = vmatprep.subr.mxu1 %v3388_v0 }
 0x108   : > { %2914 = vmatpush3.msra.mxu0 %v1492_v17 }
 0x109   : > { %2918 = vmatprep.subr.mxu0 %v3388_v0  ;;  %2916 = vmatmul.mubr.msk.f32.vlgmr.msra.gmra.mrb[0].mxu0 %vm350_vm2, %v2758_v18  ;;  %v2774_v18 = vld [vmem:[%s3794_s6 + $0xb0] sm:$0xff] }
 0x10a   : > { %v1573_v21 = vpop.permute.xlu1 %1572  ;;  %2920 = vmatprep.mubr.msk.f32.mxu0 %vm3389_vm0, %v3388_v0  ;;  %v583_v31 = vpop.permute.xlu0 %582 }
 0x10b   : > { %v1574_v22 = vsel %vm835_vm5, %v1571_v19, %v1573_v21  ;;  %v2748_v21 = vld [vmem:[%s3794_s6 + $0x48] sm:$0xff] }
 0x10c   : > { %2919 = vmatpush3.msra.mxu0 %v1574_v22 }
 0x10d   : > { %2851 = vmatmul.mubr.msk.f32.vlgmr.msra.gmra.mrb[0].mxu1 %vm350_vm2, %v338_v20  ;;  %2923 = vmatprep.subr.mxu0 %v3388_v0 }
 0x10e   : > { %v502_v24 = vpop.permute.xlu1 %501  ;;  %2855 = vmatprep.mubr.msk.f32.mxu1 %vm3389_vm0, %v3388_v0  ;;  %v1735_v35 = vpop.permute.xlu0 %1734 }
 0x10f   : > { %v504_v25 = vsel %vm503_vm6, %v500_v23, %v502_v24 }
 0x110   : > { %2854 = vmatpush3.msra.mxu1 %v504_v25  ;;  %v2776_v25 = vld [vmem:[%s3794_s6 + $0xb8] sm:$0xff] }
 0x111   : > { %2858 = vmatprep.subr.mxu1 %v3388_v0  ;;  %2921 = vmatmul.mubr.msk.f32.vlgmr.msra.gmra.mrb[0].mxu0 %vm350_vm2, %v2760_v26 }
 0x112   : > { %v1655_v29 = vpop.permute.xlu1 %1654  ;;  %2925 = vmatprep.mubr.msk.f32.mxu0 %vm3389_vm0, %v3388_v0  ;;  %v666_v39 = vpop.permute.xlu0 %665 }
 0x113   : > { %v1656_v30 = vsel %vm918_vm7, %v1653_v27, %v1655_v29  ;;  %v2750_v27 = vld [vmem:[%s3794_s6 + $0x50] sm:$0xff] }
 0x114   : > { %2924 = vmatpush3.msra.mxu0 %v1656_v30 }
 0x115   : > { %2856 = vmatmul.mubr.msk.f32.vlgmr.msra.gmra.mrb[0].mxu1 %vm350_vm2, %v2734_v28  ;;  %2928 = vmatprep.subr.mxu0 %v3388_v0 }
 0x116   : > { %v585_v32 = vpop.permute.xlu1 %584  ;;  %2860 = vmatprep.mubr.msk.f32.mxu1 %vm3389_vm0, %v3388_v0  ;;  %v749_v43 = vpop.permute.xlu0 %748 }
 0x117   : > { %v587_v33 = vsel %vm586_vm8, %v583_v31, %v585_v32  ;;  %v2778_v31 = vld [vmem:[%s3794_s6 + $0xc0] sm:$0xff] }
 0x118   : > { %2859 = vmatpush3.msra.mxu1 %v587_v33 }
 0x119   : > { %2863 = vmatprep.subr.mxu1 %v3388_v0  ;;  %2926 = vmatmul.mubr.msk.f32.vlgmr.msra.gmra.mrb[0].mxu0 %vm350_vm2, %v2762_v34 }
 0x11a   : > { %v1737_v37 = vpop.permute.xlu1 %1736  ;;  %2930 = vmatprep.mubr.msk.f32.mxu0 %vm3389_vm0, %v3388_v0  ;;  %v1897_v47 = vpop.permute.xlu0 %1896 }
 0x11b   : > { %v1738_v38 = vsel %vm1001_vm9, %v1735_v35, %v1737_v37  ;;  %v2752_v35 = vld [vmem:[%s3794_s6 + $0x58] sm:$0xff] }
 0x11c   : > { %2929 = vmatpush3.msra.mxu0 %v1738_v38 }
 0x11d   : > { %2861 = vmatmul.mubr.msk.f32.vlgmr.msra.gmra.mrb[0].mxu1 %vm350_vm2, %v2736_v36  ;;  %2933 = vmatprep.subr.mxu0 %v3388_v0 }
 0x11e   : > { %v668_v40 = vpop.permute.xlu1 %667  ;;  %2865 = vmatprep.mubr.msk.f32.mxu1 %vm3389_vm0, %v3388_v0  ;;  %v832_v50 = vpop.permute.xlu0 %831 }
 0x11f   : > { %v670_v41 = vsel %vm669_vm1, %v666_v39, %v668_v40  ;;  %v2780_v39 = vld [vmem:[%s3794_s6 + $0xc8] sm:$0xff] }
 0x120   : > { %2864 = vmatpush3.msra.mxu1 %v670_v41  ;;  %v2754_v41 = vld [vmem:[%s3794_s6 + $0x60] sm:$0xff] }
 0x121   : > { %2868 = vmatprep.subr.mxu1 %v3388_v0  ;;  %2931 = vmatmul.mubr.msk.f32.vlgmr.msra.gmra.mrb[0].mxu0 %vm350_vm2, %v2764_v42  ;;  %v2782_v42 = vld [vmem:[%s3794_s6 + $0xd0] sm:$0xff] }
 0x122   : > { %v751_v45 = vpop.permute.xlu1 %750  ;;  %2934 = vmatpush3.msra.mxu0 %v3743_v5  ;;  %2935 = vmatprep.mubr.msk.f32.mxu0 %vm3389_vm0, %v3388_v0  ;;  %v1979_v55 = vpop.permute.xlu0 %1978 }
 0x123   : > { %v753_v46 = vsel %vm752_vm4, %v749_v43, %v751_v45  ;;  %2938 = vmatprep.subr.mxu0 %v3388_v0 }
 0x125   : > { %2866 = vmatmul.mubr.msk.f32.vlgmr.msra.gmra.mrb[0].mxu1 %vm350_vm2, %v2738_v44 }
 0x126   : > { %2869 = vmatpush3.msra.mxu1 %v753_v46  ;;  %2870 = vmatprep.mubr.msk.f32.mxu1 %vm3389_vm0, %v3388_v0  ;;  %v1899_v48 = vpop.permute.xlu1 %1898  ;;  %v915_v58 = vpop.permute.xlu0 %914 }
 0x127   : > { %2873 = vmatprep.subr.mxu1 %v3388_v0  ;;  %v1900_v51 = vsel %vm347_vm3, %v1897_v47, %v1899_v48 }
 0x129   : > { %2936 = vmatmul.mubr.msk.f32.vlgmr.msra.gmra.mrb[0].mxu0 %vm350_vm2, %v2766_v49 }
 0x12a   : > { %v834_v53 = vpop.permute.xlu1 %833  ;;  %2939 = vmatpush3.msra.mxu0 %v1900_v51  ;;  %2940 = vmatprep.mubr.msk.f32.mxu0 %vm3389_vm0, %v3388_v0  ;;  %v2061_v63 = vpop.permute.xlu0 %2060 }
 0x12b   : > { %v836_v54 = vsel %vm835_vm5, %v832_v50, %v834_v53  ;;  %2943 = vmatprep.subr.mxu0 %v3388_v0 }
 0x12d   : > { %2871 = vmatmul.mubr.msk.f32.vlgmr.msra.gmra.mrb[0].mxu1 %vm350_vm2, %v2740_v52 }
 0x12e   : > { %2874 = vmatpush3.msra.mxu1 %v836_v54  ;;  %2875 = vmatprep.mubr.msk.f32.mxu1 %vm3389_vm0, %v3388_v0  ;;  %v1981_v56 = vpop.permute.xlu1 %1980  ;;  %v998_v4 = vpop.permute.xlu0 %997 }
 0x12f   : > { %2878 = vmatprep.subr.mxu1 %v3388_v0  ;;  %v1982_v59 = vsel %vm503_vm6, %v1979_v55, %v1981_v56 }
 0x131   : > { %2941 = vmatmul.mubr.msk.f32.vlgmr.msra.gmra.mrb[0].mxu0 %vm350_vm2, %v2768_v57 }
 0x132   : > { %v917_v61 = vpop.permute.xlu1 %916  ;;  %2944 = vmatpush3.msra.mxu0 %v1982_v59  ;;  %2945 = vmatprep.mubr.msk.f32.mxu0 %vm3389_vm0, %v3388_v0  ;;  %v2143_v9 = vpop.permute.xlu0 %2142 }
 0x133   : > { %v919_v62 = vsel %vm918_vm7, %v915_v58, %v917_v61  ;;  %2948 = vmatprep.subr.mxu0 %v3388_v0 }
 0x135   : > { %2876 = vmatmul.mubr.msk.f32.vlgmr.msra.gmra.mrb[0].mxu1 %vm350_vm2, %v2742_v60 }
 0x136   : > { %2879 = vmatpush3.msra.mxu1 %v919_v62  ;;  %2880 = vmatprep.mubr.msk.f32.mxu1 %vm3389_vm0, %v3388_v0  ;;  %v2063_v2 = vpop.permute.xlu1 %2062  ;;  %v2225_v12 = vpop.permute.xlu0 %2224 }
 0x137   : > { %2883 = vmatprep.subr.mxu1 %v3388_v0  ;;  %v2064_v5 = vsel %vm586_vm8, %v2061_v63, %v2063_v2 }
 0x139   : > { %2946 = vmatmul.mubr.msk.f32.vlgmr.msra.gmra.mrb[0].mxu0 %vm350_vm2, %v2770_v3 }
 0x13a   : > { %v1000_v7 = vpop.permute.xlu1 %999  ;;  %2949 = vmatpush3.msra.mxu0 %v2064_v5  ;;  %2950 = vmatprep.mubr.msk.f32.mxu0 %vm3389_vm0, %v3388_v0  ;;  %v1161_v16 = vpop.permute.xlu0 %1160 }
 0x13b   : > { %v1002_v8 = vsel %vm1001_vm9, %v998_v4, %v1000_v7  ;;  %2953 = vmatprep.subr.mxu0 %v3388_v0 }
 0x13d   : > { %2881 = vmatmul.mubr.msk.f32.vlgmr.msra.gmra.mrb[0].mxu1 %vm350_vm2, %v2744_v6 }
 0x13e   : > { %2884 = vmatpush3.msra.mxu1 %v1002_v8  ;;  %2885 = vmatprep.mubr.msk.f32.mxu1 %vm3389_vm0, %v3388_v0  ;;  %v2145_v10 = vpop.permute.xlu1 %2144  ;;  %v2307_v19 = vpop.permute.xlu0 %2306 }
 0x13f   : > { %2888 = vmatprep.subr.mxu1 %v3388_v0  ;;  %v2146_v13 = vsel %vm669_vm1, %v2143_v9, %v2145_v10 }
 0x141   : > { %2951 = vmatmul.mubr.msk.f32.vlgmr.msra.gmra.mrb[0].mxu0 %vm350_vm2, %v2772_v11 }
 0x142   : > { %v2227_v15 = vpop.permute.xlu1 %2226  ;;  %2954 = vmatpush3.msra.mxu0 %v2146_v13  ;;  %2955 = vmatprep.mubr.msk.f32.mxu0 %vm3389_vm0, %v3388_v0  ;;  %v1243_v23 = vpop.permute.xlu0 %1242 }
 0x143   : > { %2958 = vmatprep.subr.mxu0 %v3388_v0  ;;  %v2228_v20 = vsel %vm752_vm4, %v2225_v12, %v2227_v15 }
 0x145   : > { %2886 = vmatmul.mubr.msk.f32.vlgmr.msra.gmra.mrb[0].mxu1 %vm350_vm2, %v2746_v14 }
 0x146   : > { %2889 = vmatpush3.msra.mxu1 %v3705_v1  ;;  %2890 = vmatprep.mubr.msk.f32.mxu1 %vm3389_vm0, %v3388_v0  ;;  %v1163_v17 = vpop.permute.xlu1 %1162  ;;  %v2389_v28 = vpop.permute.xlu0 %2388 }
 0x147   : > { %2893 = vmatprep.subr.mxu1 %v3388_v0  ;;  %v1164_v1 = vsel %vm347_vm3, %v1161_v16, %v1163_v17 }
 0x149   : > { %2956 = vmatmul.mubr.msk.f32.vlgmr.msra.gmra.mrb[0].mxu0 %vm350_vm2, %v2774_v18 }
 0x14a   : > { %v2309_v22 = vpop.permute.xlu1 %2308  ;;  %2959 = vmatpush3.msra.mxu0 %v2228_v20  ;;  %2960 = vmatprep.mubr.msk.f32.mxu0 %vm3389_vm0, %v3388_v0  ;;  %v1325_v33 = vpop.permute.xlu0 %1324 }
 0x14b   : > { %2963 = vmatprep.subr.mxu0 %v3388_v0  ;;  %v2310_v26 = vsel %vm835_vm5, %v2307_v19, %v2309_v22 }
 0x14d   : > { %2891 = vmatmul.mubr.msk.f32.vlgmr.msra.gmra.mrb[0].mxu1 %vm350_vm2, %v2748_v21 }
 0x14e   : > { %2894 = vmatpush3.msra.mxu1 %v1164_v1  ;;  %2895 = vmatprep.mubr.msk.f32.mxu1 %vm3389_vm0, %v3388_v0  ;;  %v1245_v24 = vpop.permute.xlu1 %1244  ;;  %v2471_v37 = vpop.permute.xlu0 %2470 }
 0x14f   : > { %2898 = vmatprep.subr.mxu1 %v3388_v0  ;;  %v1246_v30 = vsel %vm503_vm6, %v1243_v23, %v1245_v24 }
 0x151   : > { %2961 = vmatmul.mubr.msk.f32.vlgmr.msra.gmra.mrb[0].mxu0 %vm350_vm2, %v2776_v25 }
 0x152   : > { %v2391_v29 = vpop.permute.xlu1 %2390  ;;  %2964 = vmatpush3.msra.mxu0 %v2310_v26  ;;  %2965 = vmatprep.mubr.msk.f32.mxu0 %vm3389_vm0, %v3388_v0 }
 0x153   : > { %2968 = vmatprep.subr.mxu0 %v3388_v0  ;;  %v2392_v32 = vsel %vm918_vm7, %v2389_v28, %v2391_v29 }
 0x155   : > { %2896 = vmatmul.mubr.msk.f32.vlgmr.msra.gmra.mrb[0].mxu1 %vm350_vm2, %v2750_v27 }
 0x156   : > { %2899 = vmatpush3.msra.mxu1 %v1246_v30  ;;  %2900 = vmatprep.mubr.msk.f32.mxu1 %vm3389_vm0, %v3388_v0  ;;  %v1327_v34 = vpop.permute.xlu1 %1326 }
 0x157   : > { %2903 = vmatprep.subr.mxu1 %v3388_v0  ;;  %v1328_v36 = vsel %vm586_vm8, %v1325_v33, %v1327_v34 }
 0x159   : > { %2966 = vmatmul.mubr.msk.f32.vlgmr.msra.gmra.mrb[0].mxu0 %vm350_vm2, %v2778_v31 }
 0x15a   : > { %2969 = vmatpush3.msra.mxu0 %v2392_v32  ;;  %2970 = vmatprep.mubr.msk.f32.mxu0 %vm3389_vm0, %v3388_v0  ;;  %v2473_v38 = vpop.permute.xlu1 %2472 }
 0x15b   : > { %2973 = vmatprep.subr.mxu0 %v3388_v0  ;;  %v2474_v40 = vsel %vm1001_vm9, %v2471_v37, %v2473_v38 }
 0x15d   : > { %2901 = vmatmul.mubr.msk.f32.vlgmr.msra.gmra.mrb[0].mxu1 %vm350_vm2, %v2752_v35 }
 0x15e   : > { %2904 = vmatpush3.msra.mxu1 %v1328_v36  ;;  %2905 = vmatprep.mubr.msk.f32.mxu1 %vm3389_vm0, %v3388_v0 }
 0x161   : > { %2971 = vmatmul.mubr.msk.f32.vlgmr.msra.gmra.mrb[0].mxu0 %vm350_vm2, %v2780_v39 }
 0x162   : > { %2974 = vmatpush3.msra.mxu0 %v2474_v40  ;;  %2975 = vmatprep.mubr.msk.f32.mxu0 %vm3389_vm0, %v3388_v0 }
 0x165   : > { %2906 = vmatmul.mubr.msk.f32.vlgmr.msra.gmra.mrb[0].mxu1 %vm350_vm2, %v2754_v41 }
 0x169   : > { %2976 = vmatmul.mubr.msk.f32.vlgmr.msra.gmra.mrb[0].mxu0 %vm350_vm2, %v2782_v42 }
 0x238   : > { %v1399_v43 = vpop.f32.mrb[0].mxu1 }
 0x239   : > { %v2907_v44 = vpop.f32.mrb[1].mxu1 }
 0x23c   : > { %v2545_v45 = vpop.f32.mrb[0].mxu0 }
 0x23d   : > { %v2978_v46 = vadd.f32 %v2545_v45, %v1399_v43  ;;  %v2977_v47 = vpop.f32.mrb[1].mxu0 }
 0x23f   : > { %2550 = vst [vmem:[%s319_s9] sm:$0xff] %v2978_v46 }
 0x240   : > { %3247 = shalt.err (!%p3244_p7)
}
 0x241   : > { %s3248_s6 = scalar_lea.hbm %s3958_s21, 128  ;;  %s3252_s4 = scalar_lea.hbm %s4090_s2, 2048 }
 0x242   : > { %p3249_p5 = scmp.ne.s32.totalorder %s3958_s21, %s3248_s6  ;;  %p3253_p0 = scmp.lt.u32.totalorder %s3958_s21, %s4090_s2 }
 0x243   : > { %p3254_p3 = scmp.lt.u32.totalorder %s3252_s4, %s3248_s6  ;;  %p3256_p6 = scmp.lt.u32.totalorder %s3248_s6, %s3958_s21 }
 0x244   : > { %p3250_p11 = pnand %p3249_p5, %p4091_p12 }
 0x245   : > { %p3255_p9 = por %p3254_p3, %p3253_p0 }
 0x246   : > { %p3251_p4 = pneg %p3250_p11 }
 0x247   : > { %p3257_p1 = por %p3256_p6, %p3255_p9 }
 0x249   : > { %p3258_p8 = pnand %p3257_p1, %p3251_p4 }
 0x24b   : > { %3261 = shalt.err (!%p3258_p8)
}
 0x24c   : > { %3035 = dma.vmem_to_hbm [thread:$0]  (%p4091_p12), %s3960_s7, 128, %s3958_s21, %s2552_s12  }
 0x24d PF: > { %p3049_p13 = scmp.ge.s32.totalorder %s3384_s28, 2  ;;  %s2579_s9 = sand.u32 1, %s3332_s15  }
 0x24e   : > { %p4092_p2 = scmp.ne.s32.totalorder %s4072_s0, 0  ;;  %s2580_s8 = scalar_lea.sflag [#allocation4], %s2579_s9 }
 0x250   : > { %p3045_p10 = pnand %p3049_p13, %p4092_p2 }
 0x252   : > { %3327 = dma.done.wait (!%p3045_p10), %s2580_s8, 128  }
 0x253   : > { %3329 = vsyncadd (!%p3045_p10), %s2580_s8, 4294967168  ;;  %s23_s28 = sadd.s32 1, %s3384_s28   ;;  %s4094_s24 = sld [smem:[#allocation13_spill]] }
 0x254   : > { %p3988_p7 = scmp.ge.s32.totalorder %s23_s28, 18   ;;  %s4095_s25 = sld [smem:[#allocation14_spill]] }
 0x255   : > { %s4096_s26 = sld [smem:[#allocation15_spill]]  ;;  %s4097_s29 = sld [smem:[#allocation16_spill]] }
 0x256   : > { %s4099_s15 = smov %s3336_s16  ;;  %s4100_s16 = smov %s3340_s17 }
 0x257   : > { %s4101_s17 = smov %s3546_s30  ;;  %s4102_s18 = smov %s3348_s19 }
 0x258   : > { %s4103_s19 = smov %s3352_s20  ;;  %s4104_s20 = smov %s3622_s5 }
 0x259   : > { %s4105_s21 = smov %s3360_s22  ;;  %s4106_s22 = smov %s3364_s23 }
 0x25a   : > { %s4107_s23 = smov %s3536_s1  ;;  %22 = sbr.rel (!%p3988_p7) target bundleno = 17 (0x11), region = 126 }
 0x25b   : > { %s4108_s27 = smov %s4097_s29 }
 0x261   :  { %2585 = vsyncpa [#allocation3], 1 }
 0x262   :  { %2587 = vsyncpa [#allocation3 + $0x1], 1 }
 0x263   :  { %2588 = vsyncpa [#allocation6], 1 }
 0x264   :  { %2590 = vsyncpa [#allocation6 + $0x1], 1 }
 0x265   :  { %2591 = vsyncpa [#allocation4], 1 }
 0x266   :  { %2593 = vsyncpa [#allocation4 + $0x1], 1 }

</bundles_post_ra>
